<compile_context>
chip_gen: v6e
topology: v6e:2x2x1
jax: 0.10.0
libtpu: 0.0.40
codegen_flags: <defaults>
</compile_context>

<pallas_src>
import jax
import jax.numpy as jnp
from jax.experimental import pallas as pl
from jax.experimental.pallas import tpu as pltpu

# Module hyper-params (from the PyTorch script)
HIDDEN_SIZE = 2
INPUT_SIZE = 5
NUM_CLASSES = 1   # must stay 1 for the multiply+reduce fc epilogue below
NUM_LAYERS = 1    # single-layer LSTM (matches the module)
FC1_SIZE = 128


def _lstm1_kernel(x_ref, wih_ref, whh_ref, b_ref,
                  w1_ref, b1_ref, w2_ref, b2_ref, out_ref):
    """Full LSTM1 forward in one kernel.

    x_ref  : (B, T, D)      input sequence (batch_first, as in PyTorch)
    wih_ref: (D, 4H)        input->gate weights, gates [i,f,g,o] along lanes
    whh_ref: (H, 4H)        hidden->gate weights (w_hh transposed)
    b_ref  : (1, 4H)        bias (b_ih + b_hh)
    w1_ref : (H, 128), b1_ref: (1, 128)    fc_1
    w2_ref : (1, 128),  b2_ref: (1, 1)     fc (num_classes == 1)
    out_ref: (B, 1)
    """
    B, T, D = x_ref.shape
    G4 = whh_ref.shape[1]          # 4 * H
    H = G4 // 4

    # ---- Hoisted fused input projection + bias: ONE MXU dot, off the
    #      serial path.  pre[b, t, g*H + j] for gate order [i, f, g, o].
    x_flat = x_ref[...].reshape(B * T, D)
    pre = (jnp.dot(x_flat, wih_ref[...],
                   preferred_element_type=jnp.float32)
           + b_ref[...]).reshape(B, T, G4)

    # Hoisted load of the (H, 4H) hidden weights; rows reused every step.
    whh = whh_ref[...]
    whh_rows = [whh[k:k + 1, :] for k in range(H)]        # each (1, 4H)

    # ---- Recurrence: h, c live in vregs; loop fully unrolled (T static).
    h = jnp.zeros((B, H), jnp.float32)
    c = jnp.zeros((B, H), jnp.float32)

    for t in range(T):
        # h @ W_hh^T for ALL four gates at once as VPU FMAs over (B, 4H).
        hid = h[:, 0:1] * whh_rows[0]
        for k in range(1, H):
            hid = hid + h[:, k:k + 1] * whh_rows[k]
        gates = pre[:, t, :] + hid                         # (B, 4H)

        # One sigmoid over all gate lanes, one tanh on the g-gate lanes.
        sig = jax.nn.sigmoid(gates)
        i_g = sig[:, 0 * H:1 * H]
        f_g = sig[:, 1 * H:2 * H]
        o_g = sig[:, 3 * H:4 * H]
        g_g = jnp.tanh(gates[:, 2 * H:3 * H])

        c = f_g * c + i_g * g_g
        h = o_g * jnp.tanh(c)

    # ---- Epilogue: relu(h_T) -> fc_1 -> relu -> fc
    hn = jnp.maximum(h, 0.0)
    out1 = jnp.dot(hn, w1_ref[...],
                   preferred_element_type=jnp.float32) + b1_ref[...]
    out1 = jnp.maximum(out1, 0.0)                          # (B, 128)
    # fc (128 -> 1): elementwise mul + lane reduction (no 1-lane MXU GEMV)
    out = jnp.sum(out1 * w2_ref[...], axis=-1, keepdims=True) + b2_ref[...]
    out_ref[...] = out.astype(out_ref.dtype)


def lstm1_forward(x, params):
    """x: (B, T, INPUT_SIZE) float32 -> (B, NUM_CLASSES) float32."""
    B, T, D = x.shape
    assert D == INPUT_SIZE
    assert NUM_CLASSES == 1  # fc epilogue in the kernel assumes 1 output lane
    H = HIDDEN_SIZE

    # Fused-gate layouts (gate order i, f, g, o kept along the lane dim).
    wih_all = params["w_ih"].T                                # (D, 4H)
    whh_all = params["w_hh"].T                                # (H, 4H)
    b_all = (params["b_ih"] + params["b_hh"])[None, :]        # (1, 4H)

    w1_t = params["w_fc1"].T                                  # (H, 128)
    b1 = params["b_fc1"][None, :]                             # (1, 128)
    w2_row = params["w_fc"]                                   # (1, 128)
    b2 = params["b_fc"][None, :]                              # (1, 1)

    full = lambda shape: pl.BlockSpec(shape, lambda i: (0,) * len(shape))

    out = pl.pallas_call(
        _lstm1_kernel,
        out_shape=jax.ShapeDtypeStruct((B, NUM_CLASSES), jnp.float32),
        grid=(1,),
        in_specs=[
            full(x.shape),
            full(wih_all.shape),
            full(whh_all.shape),
            full(b_all.shape),
            full(w1_t.shape),
            full(b1.shape),
            full(w2_row.shape),
            full(b2.shape),
        ],
        out_specs=full((B, NUM_CLASSES)),
        compiler_params=pltpu.CompilerParams(
            dimension_semantics=("arbitrary",)),
    )(x, wih_all, whh_all, b_all, w1_t, b1, w2_row, b2)
    return out


def init_params(key):
    """Deterministic parameter init matching the nn.Module's shapes."""
    ks = jax.random.split(key, 8)
    scale = 0.1
    return {
        # torch.nn.LSTM parameter shapes (gate order i, f, g, o)
        "w_ih": scale * jax.random.normal(ks[0], (4 * HIDDEN_SIZE, INPUT_SIZE), jnp.float32),
        "w_hh": scale * jax.random.normal(ks[1], (4 * HIDDEN_SIZE, HIDDEN_SIZE), jnp.float32),
        "b_ih": scale * jax.random.normal(ks[2], (4 * HIDDEN_SIZE,), jnp.float32),
        "b_hh": scale * jax.random.normal(ks[3], (4 * HIDDEN_SIZE,), jnp.float32),
        # fc_1: Linear(hidden_size, 128)
        "w_fc1": scale * jax.random.normal(ks[4], (FC1_SIZE, HIDDEN_SIZE), jnp.float32),
        "b_fc1": scale * jax.random.normal(ks[5], (FC1_SIZE,), jnp.float32),
        # fc: Linear(128, num_classes)
        "w_fc": scale * jax.random.normal(ks[6], (NUM_CLASSES, FC1_SIZE), jnp.float32),
        "b_fc": scale * jax.random.normal(ks[7], (NUM_CLASSES,), jnp.float32),
    }


def _reference_forward(x, params):
    """Pure-JAX reference of the same math (sanity check)."""
    B, T, D = x.shape
    H = HIDDEN_SIZE
    h = jnp.zeros((B, H), jnp.float32)
    c = jnp.zeros((B, H), jnp.float32)
    b = params["b_ih"] + params["b_hh"]
    for t in range(T):
        g = x[:, t, :] @ params["w_ih"].T + h @ params["w_hh"].T + b
        i_g = jax.nn.sigmoid(g[:, 0 * H:1 * H])
        f_g = jax.nn.sigmoid(g[:, 1 * H:2 * H])
        g_g = jnp.tanh(g[:, 2 * H:3 * H])
        o_g = jax.nn.sigmoid(g[:, 3 * H:4 * H])
        c = f_g * c + i_g * g_g
        h = o_g * jnp.tanh(c)
    out = jnp.maximum(h, 0.0)
    out = jnp.maximum(out @ params["w_fc1"].T + params["b_fc1"], 0.0)
    return out @ params["w_fc"].T + params["b_fc"]


if __name__ == "__main__":
    key = jax.random.PRNGKey(0)
    k_x, k_p = jax.random.split(key)

    B, T = 2, 8
    x = jax.random.normal(k_x, (B, T, INPUT_SIZE), jnp.float32)
    params = init_params(k_p)

    out = lstm1_forward(x, params)
    out = jax.block_until_ready(out)

    ref = _reference_forward(x, params)
    assert out.shape == (B, NUM_CLASSES)
    assert jnp.allclose(out, ref, atol=1e-5, rtol=1e-5), (out, ref)

    print("KERNEL_OK")
</pallas_src>

<mosaic_0001>
module attributes {stable_mosaic.version = 11 : i64} {
  func.func @_lstm1_kernel(%arg0: i32, %arg1: memref<2x8x5xf32, #tpu.memory_space<vmem>>, %arg2: memref<5x8xf32, #tpu.memory_space<vmem>>, %arg3: memref<2x8xf32, #tpu.memory_space<vmem>>, %arg4: memref<1x8xf32, #tpu.memory_space<vmem>>, %arg5: memref<2x128xf32, #tpu.memory_space<vmem>>, %arg6: memref<1x128xf32, #tpu.memory_space<vmem>>, %arg7: memref<1x128xf32, #tpu.memory_space<vmem>>, %arg8: memref<1x1xf32, #tpu.memory_space<vmem>>, %arg9: memref<2x1xf32, #tpu.memory_space<vmem>>) attributes {dimension_semantics = [#tpu.dimension_semantics<arbitrary>], iteration_bounds = array<i64: 1>, scalar_prefetch = 0 : i64, scratch_operands = 0 : i64, tpu.core_type = #tpu.core_type<tc>, window_params = [{pipeline_mode = #tpu.pipeline_mode<synchronous>, transform_indices = @transform_0, window_bounds = array<i64: 2, 8, 5>}, {pipeline_mode = #tpu.pipeline_mode<synchronous>, transform_indices = @transform_1, window_bounds = array<i64: 5, 8>}, {pipeline_mode = #tpu.pipeline_mode<synchronous>, transform_indices = @transform_2, window_bounds = array<i64: 2, 8>}, {pipeline_mode = #tpu.pipeline_mode<synchronous>, transform_indices = @transform_3, window_bounds = array<i64: 1, 8>}, {pipeline_mode = #tpu.pipeline_mode<synchronous>, transform_indices = @transform_4, window_bounds = array<i64: 2, 128>}, {pipeline_mode = #tpu.pipeline_mode<synchronous>, transform_indices = @transform_5, window_bounds = array<i64: 1, 128>}, {pipeline_mode = #tpu.pipeline_mode<synchronous>, transform_indices = @transform_6, window_bounds = array<i64: 1, 128>}, {pipeline_mode = #tpu.pipeline_mode<synchronous>, transform_indices = @transform_7, window_bounds = array<i64: 1, 1>}, {pipeline_mode = #tpu.pipeline_mode<synchronous>, transform_indices = @transform_8, window_bounds = array<i64: 2, 1>}]} {
    %c0 = arith.constant 0 : index
    %c0_0 = arith.constant 0 : index
    %c0_1 = arith.constant 0 : index
    %0 = vector.load %arg1[%c0, %c0_0, %c0_1] : memref<2x8x5xf32, #tpu.memory_space<vmem>>, vector<2x8x5xf32>
    %1 = vector.shape_cast %0 : vector<2x8x5xf32> to vector<16x5xf32>
    %c0_2 = arith.constant 0 : index
    %c0_3 = arith.constant 0 : index
    %2 = vector.load %arg2[%c0_2, %c0_3] : memref<5x8xf32, #tpu.memory_space<vmem>>, vector<5x8xf32>
    %cst = arith.constant dense<0.000000e+00> : vector<16x8xf32>
    %3 = tpu.matmul %1, %2, %cst {dimension_numbers = #tpu.dot_dimension_numbers<[1], [0], [0], [1], [0, 0, 1, 1], [], []>} : vector<16x5xf32>, vector<5x8xf32>, vector<16x8xf32> -> vector<16x8xf32>
    %c0_4 = arith.constant 0 : index
    %c0_5 = arith.constant 0 : index
    %4 = vector.load %arg4[%c0_4, %c0_5] : memref<1x8xf32, #tpu.memory_space<vmem>>, vector<1x8xf32>
    %5 = vector.broadcast %4 : vector<1x8xf32> to vector<16x8xf32>
    %6 = arith.addf %3, %5 : vector<16x8xf32>
    %7 = vector.shape_cast %6 : vector<16x8xf32> to vector<2x8x8xf32>
    %c0_6 = arith.constant 0 : index
    %c0_7 = arith.constant 0 : index
    %8 = vector.load %arg3[%c0_6, %c0_7] : memref<2x8xf32, #tpu.memory_space<vmem>>, vector<2x8xf32>
    %9 = vector.extract_strided_slice %8 {offsets = [0, 0], sizes = [1, 8], strides = [1, 1]} : vector<2x8xf32> to vector<1x8xf32>
    %10 = vector.extract_strided_slice %8 {offsets = [1, 0], sizes = [1, 8], strides = [1, 1]} : vector<2x8xf32> to vector<1x8xf32>
    %cst_8 = arith.constant 0.000000e+00 : f32
    %11 = vector.broadcast %cst_8 : f32 to vector<2x2xf32>
    %cst_9 = arith.constant 0.000000e+00 : f32
    %12 = vector.broadcast %cst_9 : f32 to vector<2x2xf32>
    %13 = vector.extract_strided_slice %11 {offsets = [0, 0], sizes = [2, 1], strides = [1, 1]} : vector<2x2xf32> to vector<2x1xf32>
    %14 = vector.broadcast %13 : vector<2x1xf32> to vector<2x8xf32>
    %15 = vector.broadcast %9 : vector<1x8xf32> to vector<2x8xf32>
    %16 = arith.mulf %14, %15 : vector<2x8xf32>
    %17 = vector.extract_strided_slice %11 {offsets = [0, 1], sizes = [2, 1], strides = [1, 1]} : vector<2x2xf32> to vector<2x1xf32>
    %18 = vector.broadcast %17 : vector<2x1xf32> to vector<2x8xf32>
    %19 = vector.broadcast %10 : vector<1x8xf32> to vector<2x8xf32>
    %20 = arith.mulf %18, %19 : vector<2x8xf32>
    %21 = arith.addf %16, %20 : vector<2x8xf32>
    %22 = vector.extract_strided_slice %7 {offsets = [0, 0, 0], sizes = [2, 1, 8], strides = [1, 1, 1]} : vector<2x8x8xf32> to vector<2x1x8xf32>
    %23 = vector.shape_cast %22 : vector<2x1x8xf32> to vector<2x8xf32>
    %24 = arith.addf %23, %21 : vector<2x8xf32>
    %25 = arith.negf %24 : vector<2x8xf32>
    %26 = math.exp %25 : vector<2x8xf32>
    %cst_10 = arith.constant 1.000000e+00 : f32
    %27 = vector.broadcast %cst_10 : f32 to vector<2x8xf32>
    %28 = arith.addf %27, %26 : vector<2x8xf32>
    %29 = arith.divf %27, %28 : vector<2x8xf32>
    %30 = vector.extract_strided_slice %29 {offsets = [0, 0], sizes = [2, 2], strides = [1, 1]} : vector<2x8xf32> to vector<2x2xf32>
    %31 = vector.extract_strided_slice %29 {offsets = [0, 2], sizes = [2, 2], strides = [1, 1]} : vector<2x8xf32> to vector<2x2xf32>
    %32 = vector.extract_strided_slice %29 {offsets = [0, 6], sizes = [2, 2], strides = [1, 1]} : vector<2x8xf32> to vector<2x2xf32>
    %33 = vector.extract_strided_slice %24 {offsets = [0, 4], sizes = [2, 2], strides = [1, 1]} : vector<2x8xf32> to vector<2x2xf32>
    %34 = math.tanh %33 : vector<2x2xf32>
    %35 = arith.mulf %31, %12 : vector<2x2xf32>
    %36 = arith.mulf %30, %34 : vector<2x2xf32>
    %37 = arith.addf %35, %36 : vector<2x2xf32>
    %38 = math.tanh %37 : vector<2x2xf32>
    %39 = arith.mulf %32, %38 : vector<2x2xf32>
    %40 = vector.extract_strided_slice %39 {offsets = [0, 0], sizes = [2, 1], strides = [1, 1]} : vector<2x2xf32> to vector<2x1xf32>
    %41 = vector.broadcast %40 : vector<2x1xf32> to vector<2x8xf32>
    %42 = vector.broadcast %9 : vector<1x8xf32> to vector<2x8xf32>
    %43 = arith.mulf %41, %42 : vector<2x8xf32>
    %44 = vector.extract_strided_slice %39 {offsets = [0, 1], sizes = [2, 1], strides = [1, 1]} : vector<2x2xf32> to vector<2x1xf32>
    %45 = vector.broadcast %44 : vector<2x1xf32> to vector<2x8xf32>
    %46 = vector.broadcast %10 : vector<1x8xf32> to vector<2x8xf32>
    %47 = arith.mulf %45, %46 : vector<2x8xf32>
    %48 = arith.addf %43, %47 : vector<2x8xf32>
    %49 = vector.extract_strided_slice %7 {offsets = [0, 1, 0], sizes = [2, 1, 8], strides = [1, 1, 1]} : vector<2x8x8xf32> to vector<2x1x8xf32>
    %50 = vector.shape_cast %49 : vector<2x1x8xf32> to vector<2x8xf32>
    %51 = arith.addf %50, %48 : vector<2x8xf32>
    %52 = arith.negf %51 : vector<2x8xf32>
    %53 = math.exp %52 : vector<2x8xf32>
    %cst_11 = arith.constant 1.000000e+00 : f32
    %54 = vector.broadcast %cst_11 : f32 to vector<2x8xf32>
    %55 = arith.addf %54, %53 : vector<2x8xf32>
    %56 = arith.divf %54, %55 : vector<2x8xf32>
    %57 = vector.extract_strided_slice %56 {offsets = [0, 0], sizes = [2, 2], strides = [1, 1]} : vector<2x8xf32> to vector<2x2xf32>
    %58 = vector.extract_strided_slice %56 {offsets = [0, 2], sizes = [2, 2], strides = [1, 1]} : vector<2x8xf32> to vector<2x2xf32>
    %59 = vector.extract_strided_slice %56 {offsets = [0, 6], sizes = [2, 2], strides = [1, 1]} : vector<2x8xf32> to vector<2x2xf32>
    %60 = vector.extract_strided_slice %51 {offsets = [0, 4], sizes = [2, 2], strides = [1, 1]} : vector<2x8xf32> to vector<2x2xf32>
    %61 = math.tanh %60 : vector<2x2xf32>
    %62 = arith.mulf %58, %37 : vector<2x2xf32>
    %63 = arith.mulf %57, %61 : vector<2x2xf32>
    %64 = arith.addf %62, %63 : vector<2x2xf32>
    %65 = math.tanh %64 : vector<2x2xf32>
    %66 = arith.mulf %59, %65 : vector<2x2xf32>
    %67 = vector.extract_strided_slice %66 {offsets = [0, 0], sizes = [2, 1], strides = [1, 1]} : vector<2x2xf32> to vector<2x1xf32>
    %68 = vector.broadcast %67 : vector<2x1xf32> to vector<2x8xf32>
    %69 = vector.broadcast %9 : vector<1x8xf32> to vector<2x8xf32>
    %70 = arith.mulf %68, %69 : vector<2x8xf32>
    %71 = vector.extract_strided_slice %66 {offsets = [0, 1], sizes = [2, 1], strides = [1, 1]} : vector<2x2xf32> to vector<2x1xf32>
    %72 = vector.broadcast %71 : vector<2x1xf32> to vector<2x8xf32>
    %73 = vector.broadcast %10 : vector<1x8xf32> to vector<2x8xf32>
    %74 = arith.mulf %72, %73 : vector<2x8xf32>
    %75 = arith.addf %70, %74 : vector<2x8xf32>
    %76 = vector.extract_strided_slice %7 {offsets = [0, 2, 0], sizes = [2, 1, 8], strides = [1, 1, 1]} : vector<2x8x8xf32> to vector<2x1x8xf32>
    %77 = vector.shape_cast %76 : vector<2x1x8xf32> to vector<2x8xf32>
    %78 = arith.addf %77, %75 : vector<2x8xf32>
    %79 = arith.negf %78 : vector<2x8xf32>
    %80 = math.exp %79 : vector<2x8xf32>
    %cst_12 = arith.constant 1.000000e+00 : f32
    %81 = vector.broadcast %cst_12 : f32 to vector<2x8xf32>
    %82 = arith.addf %81, %80 : vector<2x8xf32>
    %83 = arith.divf %81, %82 : vector<2x8xf32>
    %84 = vector.extract_strided_slice %83 {offsets = [0, 0], sizes = [2, 2], strides = [1, 1]} : vector<2x8xf32> to vector<2x2xf32>
    %85 = vector.extract_strided_slice %83 {offsets = [0, 2], sizes = [2, 2], strides = [1, 1]} : vector<2x8xf32> to vector<2x2xf32>
    %86 = vector.extract_strided_slice %83 {offsets = [0, 6], sizes = [2, 2], strides = [1, 1]} : vector<2x8xf32> to vector<2x2xf32>
    %87 = vector.extract_strided_slice %78 {offsets = [0, 4], sizes = [2, 2], strides = [1, 1]} : vector<2x8xf32> to vector<2x2xf32>
    %88 = math.tanh %87 : vector<2x2xf32>
    %89 = arith.mulf %85, %64 : vector<2x2xf32>
    %90 = arith.mulf %84, %88 : vector<2x2xf32>
    %91 = arith.addf %89, %90 : vector<2x2xf32>
    %92 = math.tanh %91 : vector<2x2xf32>
    %93 = arith.mulf %86, %92 : vector<2x2xf32>
    %94 = vector.extract_strided_slice %93 {offsets = [0, 0], sizes = [2, 1], strides = [1, 1]} : vector<2x2xf32> to vector<2x1xf32>
    %95 = vector.broadcast %94 : vector<2x1xf32> to vector<2x8xf32>
    %96 = vector.broadcast %9 : vector<1x8xf32> to vector<2x8xf32>
    %97 = arith.mulf %95, %96 : vector<2x8xf32>
    %98 = vector.extract_strided_slice %93 {offsets = [0, 1], sizes = [2, 1], strides = [1, 1]} : vector<2x2xf32> to vector<2x1xf32>
    %99 = vector.broadcast %98 : vector<2x1xf32> to vector<2x8xf32>
    %100 = vector.broadcast %10 : vector<1x8xf32> to vector<2x8xf32>
    %101 = arith.mulf %99, %100 : vector<2x8xf32>
    %102 = arith.addf %97, %101 : vector<2x8xf32>
    %103 = vector.extract_strided_slice %7 {offsets = [0, 3, 0], sizes = [2, 1, 8], strides = [1, 1, 1]} : vector<2x8x8xf32> to vector<2x1x8xf32>
    %104 = vector.shape_cast %103 : vector<2x1x8xf32> to vector<2x8xf32>
    %105 = arith.addf %104, %102 : vector<2x8xf32>
    %106 = arith.negf %105 : vector<2x8xf32>
    %107 = math.exp %106 : vector<2x8xf32>
    %cst_13 = arith.constant 1.000000e+00 : f32
    %108 = vector.broadcast %cst_13 : f32 to vector<2x8xf32>
    %109 = arith.addf %108, %107 : vector<2x8xf32>
    %110 = arith.divf %108, %109 : vector<2x8xf32>
    %111 = vector.extract_strided_slice %110 {offsets = [0, 0], sizes = [2, 2], strides = [1, 1]} : vector<2x8xf32> to vector<2x2xf32>
    %112 = vector.extract_strided_slice %110 {offsets = [0, 2], sizes = [2, 2], strides = [1, 1]} : vector<2x8xf32> to vector<2x2xf32>
    %113 = vector.extract_strided_slice %110 {offsets = [0, 6], sizes = [2, 2], strides = [1, 1]} : vector<2x8xf32> to vector<2x2xf32>
    %114 = vector.extract_strided_slice %105 {offsets = [0, 4], sizes = [2, 2], strides = [1, 1]} : vector<2x8xf32> to vector<2x2xf32>
    %115 = math.tanh %114 : vector<2x2xf32>
    %116 = arith.mulf %112, %91 : vector<2x2xf32>
    %117 = arith.mulf %111, %115 : vector<2x2xf32>
    %118 = arith.addf %116, %117 : vector<2x2xf32>
    %119 = math.tanh %118 : vector<2x2xf32>
    %120 = arith.mulf %113, %119 : vector<2x2xf32>
    %121 = vector.extract_strided_slice %120 {offsets = [0, 0], sizes = [2, 1], strides = [1, 1]} : vector<2x2xf32> to vector<2x1xf32>
    %122 = vector.broadcast %121 : vector<2x1xf32> to vector<2x8xf32>
    %123 = vector.broadcast %9 : vector<1x8xf32> to vector<2x8xf32>
    %124 = arith.mulf %122, %123 : vector<2x8xf32>
    %125 = vector.extract_strided_slice %120 {offsets = [0, 1], sizes = [2, 1], strides = [1, 1]} : vector<2x2xf32> to vector<2x1xf32>
    %126 = vector.broadcast %125 : vector<2x1xf32> to vector<2x8xf32>
    %127 = vector.broadcast %10 : vector<1x8xf32> to vector<2x8xf32>
    %128 = arith.mulf %126, %127 : vector<2x8xf32>
    %129 = arith.addf %124, %128 : vector<2x8xf32>
    %130 = vector.extract_strided_slice %7 {offsets = [0, 4, 0], sizes = [2, 1, 8], strides = [1, 1, 1]} : vector<2x8x8xf32> to vector<2x1x8xf32>
    %131 = vector.shape_cast %130 : vector<2x1x8xf32> to vector<2x8xf32>
    %132 = arith.addf %131, %129 : vector<2x8xf32>
    %133 = arith.negf %132 : vector<2x8xf32>
    %134 = math.exp %133 : vector<2x8xf32>
    %cst_14 = arith.constant 1.000000e+00 : f32
    %135 = vector.broadcast %cst_14 : f32 to vector<2x8xf32>
    %136 = arith.addf %135, %134 : vector<2x8xf32>
    %137 = arith.divf %135, %136 : vector<2x8xf32>
    %138 = vector.extract_strided_slice %137 {offsets = [0, 0], sizes = [2, 2], strides = [1, 1]} : vector<2x8xf32> to vector<2x2xf32>
    %139 = vector.extract_strided_slice %137 {offsets = [0, 2], sizes = [2, 2], strides = [1, 1]} : vector<2x8xf32> to vector<2x2xf32>
    %140 = vector.extract_strided_slice %137 {offsets = [0, 6], sizes = [2, 2], strides = [1, 1]} : vector<2x8xf32> to vector<2x2xf32>
    %141 = vector.extract_strided_slice %132 {offsets = [0, 4], sizes = [2, 2], strides = [1, 1]} : vector<2x8xf32> to vector<2x2xf32>
    %142 = math.tanh %141 : vector<2x2xf32>
    %143 = arith.mulf %139, %118 : vector<2x2xf32>
    %144 = arith.mulf %138, %142 : vector<2x2xf32>
    %145 = arith.addf %143, %144 : vector<2x2xf32>
    %146 = math.tanh %145 : vector<2x2xf32>
    %147 = arith.mulf %140, %146 : vector<2x2xf32>
    %148 = vector.extract_strided_slice %147 {offsets = [0, 0], sizes = [2, 1], strides = [1, 1]} : vector<2x2xf32> to vector<2x1xf32>
    %149 = vector.broadcast %148 : vector<2x1xf32> to vector<2x8xf32>
    %150 = vector.broadcast %9 : vector<1x8xf32> to vector<2x8xf32>
    %151 = arith.mulf %149, %150 : vector<2x8xf32>
    %152 = vector.extract_strided_slice %147 {offsets = [0, 1], sizes = [2, 1], strides = [1, 1]} : vector<2x2xf32> to vector<2x1xf32>
    %153 = vector.broadcast %152 : vector<2x1xf32> to vector<2x8xf32>
    %154 = vector.broadcast %10 : vector<1x8xf32> to vector<2x8xf32>
    %155 = arith.mulf %153, %154 : vector<2x8xf32>
    %156 = arith.addf %151, %155 : vector<2x8xf32>
    %157 = vector.extract_strided_slice %7 {offsets = [0, 5, 0], sizes = [2, 1, 8], strides = [1, 1, 1]} : vector<2x8x8xf32> to vector<2x1x8xf32>
    %158 = vector.shape_cast %157 : vector<2x1x8xf32> to vector<2x8xf32>
    %159 = arith.addf %158, %156 : vector<2x8xf32>
    %160 = arith.negf %159 : vector<2x8xf32>
    %161 = math.exp %160 : vector<2x8xf32>
    %cst_15 = arith.constant 1.000000e+00 : f32
    %162 = vector.broadcast %cst_15 : f32 to vector<2x8xf32>
    %163 = arith.addf %162, %161 : vector<2x8xf32>
    %164 = arith.divf %162, %163 : vector<2x8xf32>
    %165 = vector.extract_strided_slice %164 {offsets = [0, 0], sizes = [2, 2], strides = [1, 1]} : vector<2x8xf32> to vector<2x2xf32>
    %166 = vector.extract_strided_slice %164 {offsets = [0, 2], sizes = [2, 2], strides = [1, 1]} : vector<2x8xf32> to vector<2x2xf32>
    %167 = vector.extract_strided_slice %164 {offsets = [0, 6], sizes = [2, 2], strides = [1, 1]} : vector<2x8xf32> to vector<2x2xf32>
    %168 = vector.extract_strided_slice %159 {offsets = [0, 4], sizes = [2, 2], strides = [1, 1]} : vector<2x8xf32> to vector<2x2xf32>
    %169 = math.tanh %168 : vector<2x2xf32>
    %170 = arith.mulf %166, %145 : vector<2x2xf32>
    %171 = arith.mulf %165, %169 : vector<2x2xf32>
    %172 = arith.addf %170, %171 : vector<2x2xf32>
    %173 = math.tanh %172 : vector<2x2xf32>
    %174 = arith.mulf %167, %173 : vector<2x2xf32>
    %175 = vector.extract_strided_slice %174 {offsets = [0, 0], sizes = [2, 1], strides = [1, 1]} : vector<2x2xf32> to vector<2x1xf32>
    %176 = vector.broadcast %175 : vector<2x1xf32> to vector<2x8xf32>
    %177 = vector.broadcast %9 : vector<1x8xf32> to vector<2x8xf32>
    %178 = arith.mulf %176, %177 : vector<2x8xf32>
    %179 = vector.extract_strided_slice %174 {offsets = [0, 1], sizes = [2, 1], strides = [1, 1]} : vector<2x2xf32> to vector<2x1xf32>
    %180 = vector.broadcast %179 : vector<2x1xf32> to vector<2x8xf32>
    %181 = vector.broadcast %10 : vector<1x8xf32> to vector<2x8xf32>
    %182 = arith.mulf %180, %181 : vector<2x8xf32>
    %183 = arith.addf %178, %182 : vector<2x8xf32>
    %184 = vector.extract_strided_slice %7 {offsets = [0, 6, 0], sizes = [2, 1, 8], strides = [1, 1, 1]} : vector<2x8x8xf32> to vector<2x1x8xf32>
    %185 = vector.shape_cast %184 : vector<2x1x8xf32> to vector<2x8xf32>
    %186 = arith.addf %185, %183 : vector<2x8xf32>
    %187 = arith.negf %186 : vector<2x8xf32>
    %188 = math.exp %187 : vector<2x8xf32>
    %cst_16 = arith.constant 1.000000e+00 : f32
    %189 = vector.broadcast %cst_16 : f32 to vector<2x8xf32>
    %190 = arith.addf %189, %188 : vector<2x8xf32>
    %191 = arith.divf %189, %190 : vector<2x8xf32>
    %192 = vector.extract_strided_slice %191 {offsets = [0, 0], sizes = [2, 2], strides = [1, 1]} : vector<2x8xf32> to vector<2x2xf32>
    %193 = vector.extract_strided_slice %191 {offsets = [0, 2], sizes = [2, 2], strides = [1, 1]} : vector<2x8xf32> to vector<2x2xf32>
    %194 = vector.extract_strided_slice %191 {offsets = [0, 6], sizes = [2, 2], strides = [1, 1]} : vector<2x8xf32> to vector<2x2xf32>
    %195 = vector.extract_strided_slice %186 {offsets = [0, 4], sizes = [2, 2], strides = [1, 1]} : vector<2x8xf32> to vector<2x2xf32>
    %196 = math.tanh %195 : vector<2x2xf32>
    %197 = arith.mulf %193, %172 : vector<2x2xf32>
    %198 = arith.mulf %192, %196 : vector<2x2xf32>
    %199 = arith.addf %197, %198 : vector<2x2xf32>
    %200 = math.tanh %199 : vector<2x2xf32>
    %201 = arith.mulf %194, %200 : vector<2x2xf32>
    %202 = vector.extract_strided_slice %201 {offsets = [0, 0], sizes = [2, 1], strides = [1, 1]} : vector<2x2xf32> to vector<2x1xf32>
    %203 = vector.broadcast %202 : vector<2x1xf32> to vector<2x8xf32>
    %204 = vector.broadcast %9 : vector<1x8xf32> to vector<2x8xf32>
    %205 = arith.mulf %203, %204 : vector<2x8xf32>
    %206 = vector.extract_strided_slice %201 {offsets = [0, 1], sizes = [2, 1], strides = [1, 1]} : vector<2x2xf32> to vector<2x1xf32>
    %207 = vector.broadcast %206 : vector<2x1xf32> to vector<2x8xf32>
    %208 = vector.broadcast %10 : vector<1x8xf32> to vector<2x8xf32>
    %209 = arith.mulf %207, %208 : vector<2x8xf32>
    %210 = arith.addf %205, %209 : vector<2x8xf32>
    %211 = vector.extract_strided_slice %7 {offsets = [0, 7, 0], sizes = [2, 1, 8], strides = [1, 1, 1]} : vector<2x8x8xf32> to vector<2x1x8xf32>
    %212 = vector.shape_cast %211 : vector<2x1x8xf32> to vector<2x8xf32>
    %213 = arith.addf %212, %210 : vector<2x8xf32>
    %214 = arith.negf %213 : vector<2x8xf32>
    %215 = math.exp %214 : vector<2x8xf32>
    %cst_17 = arith.constant 1.000000e+00 : f32
    %216 = vector.broadcast %cst_17 : f32 to vector<2x8xf32>
    %217 = arith.addf %216, %215 : vector<2x8xf32>
    %218 = arith.divf %216, %217 : vector<2x8xf32>
    %219 = vector.extract_strided_slice %218 {offsets = [0, 0], sizes = [2, 2], strides = [1, 1]} : vector<2x8xf32> to vector<2x2xf32>
    %220 = vector.extract_strided_slice %218 {offsets = [0, 2], sizes = [2, 2], strides = [1, 1]} : vector<2x8xf32> to vector<2x2xf32>
    %221 = vector.extract_strided_slice %218 {offsets = [0, 6], sizes = [2, 2], strides = [1, 1]} : vector<2x8xf32> to vector<2x2xf32>
    %222 = vector.extract_strided_slice %213 {offsets = [0, 4], sizes = [2, 2], strides = [1, 1]} : vector<2x8xf32> to vector<2x2xf32>
    %223 = math.tanh %222 : vector<2x2xf32>
    %224 = arith.mulf %220, %199 : vector<2x2xf32>
    %225 = arith.mulf %219, %223 : vector<2x2xf32>
    %226 = arith.addf %224, %225 : vector<2x2xf32>
    %227 = math.tanh %226 : vector<2x2xf32>
    %228 = arith.mulf %221, %227 : vector<2x2xf32>
    %cst_18 = arith.constant 0.000000e+00 : f32
    %229 = vector.broadcast %cst_18 : f32 to vector<2x2xf32>
    %230 = arith.maximumf %228, %229 : vector<2x2xf32>
    %c0_19 = arith.constant 0 : index
    %c0_20 = arith.constant 0 : index
    %231 = vector.load %arg5[%c0_19, %c0_20] : memref<2x128xf32, #tpu.memory_space<vmem>>, vector<2x128xf32>
    %cst_21 = arith.constant dense<0.000000e+00> : vector<2x128xf32>
    %232 = tpu.matmul %230, %231, %cst_21 {dimension_numbers = #tpu.dot_dimension_numbers<[1], [0], [0], [1], [0, 0, 1, 1], [], []>} : vector<2x2xf32>, vector<2x128xf32>, vector<2x128xf32> -> vector<2x128xf32>
    %c0_22 = arith.constant 0 : index
    %c0_23 = arith.constant 0 : index
    %233 = vector.load %arg6[%c0_22, %c0_23] : memref<1x128xf32, #tpu.memory_space<vmem>>, vector<1x128xf32>
    %234 = vector.broadcast %233 : vector<1x128xf32> to vector<2x128xf32>
    %235 = arith.addf %232, %234 : vector<2x128xf32>
    %cst_24 = arith.constant 0.000000e+00 : f32
    %236 = vector.broadcast %cst_24 : f32 to vector<2x128xf32>
    %237 = arith.maximumf %235, %236 : vector<2x128xf32>
    %c0_25 = arith.constant 0 : index
    %c0_26 = arith.constant 0 : index
    %238 = vector.load %arg7[%c0_25, %c0_26] : memref<1x128xf32, #tpu.memory_space<vmem>>, vector<1x128xf32>
    %239 = vector.broadcast %238 : vector<1x128xf32> to vector<2x128xf32>
    %240 = arith.mulf %237, %239 : vector<2x128xf32>
    %cst_27 = arith.constant dense<0.000000e+00> : vector<2xf32>
    %241 = vector.multi_reduction <add>, %240, %cst_27 [1] : vector<2x128xf32> to vector<2xf32>
    %242 = vector.shape_cast %241 : vector<2xf32> to vector<2x1xf32>
    %c0_28 = arith.constant 0 : index
    %c0_29 = arith.constant 0 : index
    %243 = vector.load %arg8[%c0_28, %c0_29] : memref<1x1xf32, #tpu.memory_space<vmem>>, vector<1x1xf32>
    %244 = vector.broadcast %243 : vector<1x1xf32> to vector<2x1xf32>
    %245 = arith.addf %242, %244 : vector<2x1xf32>
    %c0_30 = arith.constant 0 : index
    %c0_31 = arith.constant 0 : index
    %246 = vector.load %arg9[%c0_30, %c0_31] : memref<2x1xf32, #tpu.memory_space<vmem>>, vector<2x1xf32>
    tpu.vector_store %arg9[%c0_30, %c0_31], %245 {strides = array<i32>} : memref<2x1xf32, #tpu.memory_space<vmem>>, vector<2x1xf32>,
    return
  }
  func.func @transform_0(%arg0: i32) -> (i32, i32, i32) {
    %c0_i32 = arith.constant 0 : i32
    %c0_i32_0 = arith.constant 0 : i32
    %c0_i32_1 = arith.constant 0 : i32
    %c0_i32_2 = arith.constant 0 : i32
    return %c0_i32, %c0_i32_0, %c0_i32_1 : i32, i32, i32
  }
  func.func @transform_1(%arg0: i32) -> (i32, i32) {
    %c0_i32 = arith.constant 0 : i32
    %c0_i32_0 = arith.constant 0 : i32
    %c0_i32_1 = arith.constant 0 : i32
    return %c0_i32, %c0_i32_0 : i32, i32
  }
  func.func @transform_2(%arg0: i32) -> (i32, i32) {
    %c0_i32 = arith.constant 0 : i32
    %c0_i32_0 = arith.constant 0 : i32
    %c0_i32_1 = arith.constant 0 : i32
    return %c0_i32, %c0_i32_0 : i32, i32
  }
  func.func @transform_3(%arg0: i32) -> (i32, i32) {
    %c0_i32 = arith.constant 0 : i32
    %c0_i32_0 = arith.constant 0 : i32
    %c0_i32_1 = arith.constant 0 : i32
    return %c0_i32, %c0_i32_0 : i32, i32
  }
  func.func @transform_4(%arg0: i32) -> (i32, i32) {
    %c0_i32 = arith.constant 0 : i32
    %c0_i32_0 = arith.constant 0 : i32
    %c0_i32_1 = arith.constant 0 : i32
    return %c0_i32, %c0_i32_0 : i32, i32
  }
  func.func @transform_5(%arg0: i32) -> (i32, i32) {
    %c0_i32 = arith.constant 0 : i32
    %c0_i32_0 = arith.constant 0 : i32
    %c0_i32_1 = arith.constant 0 : i32
    return %c0_i32, %c0_i32_0 : i32, i32
  }
  func.func @transform_6(%arg0: i32) -> (i32, i32) {
    %c0_i32 = arith.constant 0 : i32
    %c0_i32_0 = arith.constant 0 : i32
    %c0_i32_1 = arith.constant 0 : i32
    return %c0_i32, %c0_i32_0 : i32, i32
  }
  func.func @transform_7(%arg0: i32) -> (i32, i32) {
    %c0_i32 = arith.constant 0 : i32
    %c0_i32_0 = arith.constant 0 : i32
    %c0_i32_1 = arith.constant 0 : i32
    return %c0_i32, %c0_i32_0 : i32, i32
  }
  func.func @transform_8(%arg0: i32) -> (i32, i32) {
    %c0_i32 = arith.constant 0 : i32
    %c0_i32_0 = arith.constant 0 : i32
    %c0_i32_1 = arith.constant 0 : i32
    return %c0_i32, %c0_i32_0 : i32, i32
  }
}

</mosaic_0001>

<bundles_post_ra>
// kernel: tpu_custom_call.1
= control target key start
LH: loop header
LB: loop body
LE: loop exit
PB: predicated region body
PF: predicated region fallthrough
CT: control target
= control target key end

     0   :  { %vm48_vm0 = vcmask 1044480   ;;  %vm41_vm1 = vcmask 39936   ;;  %v128_v3 = vlaneseq  ;;  %v1118_v40 = vmov 6   ;;  %s1119_s13 = smov 4   ;;  %s1359_s1 = inlined_call_operand.vmem [shape: f32[5,8], index: 1, kind: input, shape index: {}]   ;;  %s1360_s0 = inlined_call_operand.vmem [shape: f32[2,8,5], index: 0, kind: input, shape index: {}]   ;;  %s1361_s2 = inlined_call_operand.vmem [shape: f32[2,8], index: 2, kind: input, shape index: {}]   ;;  %s1362_s3 = inlined_call_operand.vmem [shape: f32[1,8], index: 3, kind: input, shape index: {}]   ;;  %s1363_s4 = inlined_call_operand.vmem [shape: f32[2,128], index: 4, kind: input, shape index: {}]   ;;  %s1364_s7 = inlined_call_operand.<no memory space> [shape: f32[1,1], index: 7, kind: input, shape index: {}]   ;;  %s1365_s5 = inlined_call_operand.vmem [shape: f32[1,128], index: 5, kind: input, shape index: {}]   ;;  %s1366_s6 = inlined_call_operand.vmem [shape: f32[1,128], index: 6, kind: input, shape index: {}]   ;;  %s1367_s8 = inlined_call_operand.vmem [shape: f32[2,1], index: 8, kind: output, shape index: {}]  }
   0x1   :  { %v33_v0 = vld [vmem:[%s1359_s1] sm:$0x1f]  ;;  %v32_v2 = vld [vmem:[%s1360_s0 + $0x8] sm:$0xff]  ;;  %961 = vset.pattern.permute.xlu0 %v1118_v40  ;;  %960 = vset.pattern.permute.xlu1 %v1118_v40  ;;  %v1120_v47 = vmov 7   ;;  %vm812_vm2 = vcmask 1041408   ;;  %vm1122_vm3 = vmmov 0  }
   0x2   :  { %v31_v1 = vld [vmem:[%s1360_s0] sm:$0xff]  ;;  %942 = vmatprep.subr.msk.mxu0 %vm48_vm0, %v33_v0  ;;  %v129_v4 = vshrl.u32 %v128_v3, 7  ;;  %vm805_vm4 = vcmask 1041409   ;;  %vm809_vm5 = vcmask 15360   ;;  %vm906_vm6 = vcmask 1024  }
   0x3   :  { %944 = vmatprep.mubr.msk.f32.mxu0 %vm41_vm1, %v31_v1  ;;  %943 = vmatpush3.msk.msra.mxu0 %vm48_vm0, %v33_v0  ;;  %v127_v7 = vld [vmem:[%s1361_s2] sm:$0x3]  ;;  %s1116_s2 = smov 124  }
   0x4   :  { %945 = vmatmul.mubr.msk.f32.vlgmr.msra.gmra.mxu0 %vm41_vm1, %v32_v2  ;;  %v130_v5 = vsub.s32 0, %v129_v4  ;;  %v135_v6 = vsub.s32 1, %v129_v4  ;;  %v912_v13 = vld [vmem:[%s1362_s3] ss:$0 sm:$0xff]  ;;  %s1117_s3 = smov 2  }
   0x6   :  { %v1181_v8 = vrot.slane %v127_v7, %v130_v5  ;;  %v1183_v9 = vrot.slane %v127_v7, %v135_v6 }
   0x8   :  { %v132_v10 = vmul.f32 0.0, %v1181_v8  ;;  %v137_v11 = vmul.f32 0.0, %v1183_v9 }
   0xa   :  { %v138_v16 = vadd.f32 %v137_v11, %v132_v10 }
  0xc4   :  { %v946_v12 = vpop.f32.mrf.mxu0 }
  0xc5   :  { %v1192_v17 = vadd.f32 %v946_v12, %v912_v13 }
  0xc6   :  { %v118_v14 = vpop.f32.mrf.mxu0 }
  0xc7   :  { %v1190_v15 = vadd.f32 %v912_v13, %v118_v14  ;;  %v140_v19 = vadd.f32 %v138_v16, %v1192_v17 }
  0xc9   :  { %v139_v18 = vadd.f32 %v138_v16, %v1190_v15  ;;  %v917_v23 = vmul.f32 -1.442695, %v140_v19 }
  0xcb   :  { %988 = vtanh.f32 %v139_v18  ;;  %v916_v22 = vmul.f32 -1.442695, %v139_v18 }
  0xcc   :  { %990 = vtanh.f32 %v140_v19 }
  0xcd   :  { %992 = vpow2.f32 %v916_v22 }
  0xce   :  { %994 = vpow2.f32 %v917_v23 }
  0xd8   :  { %v989_v20 = vpop.eup %988 }
  0xd9   :  { %159 = vrot.lane.b32.xlu0 %v989_v20, %s1116_s2  ;;  %v991_v21 = vpop.eup %990 }
  0xda   :  { %v993_v24 = vpop.eup %992 }
  0xdb   :  { %v147_v25 = vadd.f32 1.0, %v993_v24  ;;  %v995_v26 = vpop.eup %994 }
  0xdc   :  { %v148_v27 = vadd.f32 1.0, %v995_v26 }
  0xdd   :  { %161 = vrot.lane.b32.xlu0 %v991_v21, %s1116_s2  ;;  %996 = vrcp.f32 %v147_v25 }
  0xde   :  { %998 = vrcp.f32 %v148_v27 }
  0xea   :  { %v997_v28 = vpop.eup %996 }
  0xeb   :  { %v999_v31 = vpop.eup %998  ;;  %v155_v34 = vmul.f32 0.0, %v997_v28 }
  0xec   :  { %v156_v37 = vmul.f32 0.0, %v999_v31 }
 0x14b   :  { %v160_v29 = vpop.permute.xlu0 %159 }
 0x14c   :  { %v165_v30 = vmul.f32 %v997_v28, %v160_v29 }
 0x14e   :  { %169 = vrot.lane.b32.xlu1 %v165_v30, %s1117_s3 }
 0x14f   :  { %v162_v32 = vpop.permute.xlu0 %161 }
 0x150   :  { %v166_v33 = vmul.f32 %v999_v31, %v162_v32 }
 0x152   :  { %171 = vrot.lane.b32.xlu1 %v166_v33, %s1117_s3 }
 0x1c0   :  { %v170_v35 = vpop.permute.xlu1 %169 }
 0x1c1   :  { %v1200_v36 = vadd.f32 %v170_v35, %v155_v34 }
 0x1c3   :  { %1000 = vtanh.f32 %v1200_v36  ;;  %v237_v14 = vrot.slane %v1200_v36, 7 }
 0x1c4   :  { %v172_v38 = vpop.permute.xlu1 %171 }
 0x1c5   :  { %v1203_v39 = vadd.f32 %v172_v38, %v156_v37 }
 0x1c7   :  { %1002 = vtanh.f32 %v1203_v39  ;;  %v238_v19 = vrot.slane %v1203_v39, 7 }
 0x1d0   :  { %v1001_v41 = vpop.eup %1000 }
 0x1d1   :  { %181 = vrot.lane.b32.xlu0 %v1001_v41, %s1119_s13 }
 0x1d4   :  { %v1003_v42 = vpop.eup %1002 }
 0x1d5   :  { %183 = vrot.lane.b32.xlu1 %v1003_v42, %s1119_s13 }
 0x243   :  { %v182_v43 = vpop.permute.xlu0 %181 }
 0x244   :  { %v187_v44 = vmul.f32 %v997_v28, %v182_v43 }
 0x246   :  { %191 = vperm.xlu0 %961, %v187_v44  }
 0x247   :  { %v184_v45 = vpop.permute.xlu1 %183 }
 0x248   :  { %v188_v46 = vmul.f32 %v999_v31, %v184_v45 }
 0x24a   :  { %196 = vperm.xlu1 %960, %v188_v46   ;;  %963 = vset.pattern.permute.xlu0 %v1120_v47 }
 0x24b   :  { %206 = vperm.xlu0 %963, %v188_v46  }
 0x24e   :  { %962 = vset.pattern.permute.xlu1 %v1120_v47 }
 0x24f   :  { %202 = vperm.xlu1 %962, %v187_v44   ;;  %965 = vset.pattern.permute.xlu0 %v1118_v40 }
 0x253   :  { %964 = vset.pattern.permute.xlu1 %v1118_v40 }
 0x2c1   :  { %v192_v48 = vpop.permute.xlu0 %191 }
 0x2c2   :  { %v199_v54 = vmul.f32 %v192_v48, %v1181_v8 }
 0x2c5   :  { %v197_v49 = vpop.permute.xlu1 %196 }
 0x2c6   :  { %v207_v50 = vpop.permute.xlu0 %206  ;;  %v200_v51 = vmul.f32 %v197_v49, %v1181_v8 }
 0x2c7   :  { %v210_v52 = vmul.f32 %v207_v50, %v1183_v9 }
 0x2c9   :  { %v212_v55 = vadd.f32 %v210_v52, %v200_v51 }
 0x2ca   :  { %v203_v53 = vpop.permute.xlu1 %202 }
 0x2cb   :  { %v209_v56 = vmul.f32 %v203_v53, %v1183_v9  ;;  %v216_v58 = vrot.slane %v212_v55, 7 }
 0x2cd   :  { %v211_v57 = vadd.f32 %v209_v56, %v199_v54  ;;  %v220_v61 = vadd.f32 %v216_v58, %v1192_v17 }
 0x2cf   :  { %v215_v59 = vrot.slane %v211_v57, 7  ;;  %v919_v1 = vmul.f32 -1.442695, %v220_v61 }
 0x2d1   :  { %v219_v60 = vadd.f32 %v215_v59, %v1190_v15 }
 0x2d3   :  { %1004 = vtanh.f32 %v219_v60  ;;  %v918_v0 = vmul.f32 -1.442695, %v219_v60 }
 0x2d4   :  { %1006 = vtanh.f32 %v220_v61 }
 0x2d5   :  { %1008 = vpow2.f32 %v918_v0 }
 0x2d6   :  { %1010 = vpow2.f32 %v919_v1 }
 0x2e0   :  { %v1005_v62 = vpop.eup %1004 }
 0x2e1   :  { %245 = vrot.lane.b32.xlu1 %v1005_v62, %s1116_s2  ;;  %v1007_v63 = vpop.eup %1006 }
 0x2e2   :  { %v1009_v2 = vpop.eup %1008 }
 0x2e3   :  { %v227_v3 = vadd.f32 1.0, %v1009_v2  ;;  %v1011_v4 = vpop.eup %1010 }
 0x2e4   :  { %v228_v5 = vadd.f32 1.0, %v1011_v4 }
 0x2e5   :  { %247 = vrot.lane.b32.xlu1 %v1007_v63, %s1116_s2  ;;  %1012 = vrcp.f32 %v227_v3 }
 0x2e6   :  { %1014 = vrcp.f32 %v228_v5 }
 0x2f2   :  { %v1013_v6 = vpop.eup %1012 }
 0x2f3   :  { %v1015_v11 = vpop.eup %1014  ;;  %v241_v16 = vmul.f32 %v1013_v6, %v237_v14 }
 0x2f4   :  { %v242_v21 = vmul.f32 %v1015_v11, %v238_v19 }
 0x353   :  { %v246_v7 = vpop.permute.xlu1 %245 }
 0x354   :  { %v251_v10 = vmul.f32 %v1013_v6, %v246_v7 }
 0x356   :  { %255 = vrot.lane.b32.xlu0 %v251_v10, %s1117_s3 }
 0x357   :  { %v248_v12 = vpop.permute.xlu1 %247 }
 0x358   :  { %v252_v13 = vmul.f32 %v1015_v11, %v248_v12 }
 0x35a   :  { %257 = vrot.lane.b32.xlu1 %v252_v13, %s1117_s3 }
 0x3c8   :  { %v256_v18 = vpop.permute.xlu0 %255 }
 0x3c9   :  { %v261_v20 = vadd.f32 %v256_v18, %v241_v16 }
 0x3cb   :  { %1016 = vtanh.f32 %v261_v20  ;;  %v323_v60 = vrot.slane %v261_v20, 7 }
 0x3cc   :  { %v258_v22 = vpop.permute.xlu1 %257 }
 0x3cd   :  { %v1226_v23 = vadd.f32 %v258_v22, %v242_v21 }
 0x3cf   :  { %1018 = vtanh.f32 %v1226_v23  ;;  %v324_v63 = vrot.slane %v1226_v23, 7 }
 0x3d8   :  { %v1017_v24 = vpop.eup %1016 }
 0x3d9   :  { %267 = vrot.lane.b32.xlu0 %v1017_v24, %s1119_s13 }
 0x3dc   :  { %v1019_v25 = vpop.eup %1018 }
 0x3dd   :  { %269 = vrot.lane.b32.xlu1 %v1019_v25, %s1119_s13 }
 0x44b   :  { %v268_v26 = vpop.permute.xlu0 %267 }
 0x44c   :  { %v273_v27 = vmul.f32 %v1013_v6, %v268_v26 }
 0x44e   :  { %277 = vperm.xlu0 %965, %v273_v27  }
 0x44f   :  { %v270_v28 = vpop.permute.xlu1 %269 }
 0x450   :  { %v274_v29 = vmul.f32 %v1015_v11, %v270_v28 }
 0x452   :  { %282 = vperm.xlu1 %964, %v274_v29   ;;  %967 = vset.pattern.permute.xlu0 %v1120_v47 }
 0x453   :  { %292 = vperm.xlu0 %967, %v274_v29  }
 0x456   :  { %966 = vset.pattern.permute.xlu1 %v1120_v47 }
 0x457   :  { %288 = vperm.xlu1 %966, %v273_v27   ;;  %969 = vset.pattern.permute.xlu0 %v1118_v40 }
 0x45b   :  { %968 = vset.pattern.permute.xlu1 %v1118_v40 }
 0x4c9   :  { %v278_v30 = vpop.permute.xlu0 %277 }
 0x4ca   :  { %v285_v36 = vmul.f32 %v278_v30, %v1181_v8 }
 0x4cd   :  { %v283_v31 = vpop.permute.xlu1 %282 }
 0x4ce   :  { %v293_v32 = vpop.permute.xlu0 %292  ;;  %v286_v33 = vmul.f32 %v283_v31, %v1181_v8 }
 0x4cf   :  { %v296_v34 = vmul.f32 %v293_v32, %v1183_v9 }
 0x4d1   :  { %v298_v37 = vadd.f32 %v296_v34, %v286_v33 }
 0x4d2   :  { %v289_v35 = vpop.permute.xlu1 %288 }
 0x4d3   :  { %v295_v38 = vmul.f32 %v289_v35, %v1183_v9  ;;  %v302_v41 = vrot.slane %v298_v37, 7 }
 0x4d5   :  { %v297_v39 = vadd.f32 %v295_v38, %v285_v36  ;;  %v306_v44 = vadd.f32 %v302_v41, %v1192_v17 }
 0x4d7   :  { %v301_v42 = vrot.slane %v297_v39, 7  ;;  %v921_v49 = vmul.f32 -1.442695, %v306_v44 }
 0x4d9   :  { %v305_v43 = vadd.f32 %v301_v42, %v1190_v15 }
 0x4db   :  { %1020 = vtanh.f32 %v305_v43  ;;  %v920_v48 = vmul.f32 -1.442695, %v305_v43 }
 0x4dc   :  { %1022 = vtanh.f32 %v306_v44 }
 0x4dd   :  { %1024 = vpow2.f32 %v920_v48 }
 0x4de   :  { %1026 = vpow2.f32 %v921_v49 }
 0x4e8   :  { %v1021_v45 = vpop.eup %1020 }
 0x4e9   :  { %331 = vrot.lane.b32.xlu1 %v1021_v45, %s1116_s2  ;;  %v1023_v46 = vpop.eup %1022 }
 0x4ea   :  { %v1025_v50 = vpop.eup %1024 }
 0x4eb   :  { %v313_v51 = vadd.f32 1.0, %v1025_v50  ;;  %v1027_v52 = vpop.eup %1026 }
 0x4ec   :  { %v314_v53 = vadd.f32 1.0, %v1027_v52 }
 0x4ed   :  { %333 = vrot.lane.b32.xlu1 %v1023_v46, %s1116_s2  ;;  %1028 = vrcp.f32 %v313_v51 }
 0x4ee   :  { %1030 = vrcp.f32 %v314_v53 }
 0x4fa   :  { %v1029_v54 = vpop.eup %1028 }
 0x4fb   :  { %v1031_v57 = vpop.eup %1030  ;;  %v327_v61 = vmul.f32 %v1029_v54, %v323_v60 }
 0x4fc   :  { %v328_v1 = vmul.f32 %v1031_v57, %v324_v63 }
 0x55b   :  { %v332_v55 = vpop.permute.xlu1 %331 }
 0x55c   :  { %v337_v56 = vmul.f32 %v1029_v54, %v332_v55 }
 0x55e   :  { %341 = vrot.lane.b32.xlu0 %v337_v56, %s1117_s3 }
 0x55f   :  { %v334_v58 = vpop.permute.xlu1 %333 }
 0x560   :  { %v338_v59 = vmul.f32 %v1031_v57, %v334_v58 }
 0x562   :  { %343 = vrot.lane.b32.xlu1 %v338_v59, %s1117_s3 }
 0x5d0   :  { %v342_v62 = vpop.permute.xlu0 %341 }
 0x5d1   :  { %v347_v0 = vadd.f32 %v342_v62, %v327_v61 }
 0x5d3   :  { %1032 = vtanh.f32 %v347_v0  ;;  %v409_v43 = vrot.slane %v347_v0, 7 }
 0x5d4   :  { %v344_v2 = vpop.permute.xlu1 %343 }
 0x5d5   :  { %v1246_v3 = vadd.f32 %v344_v2, %v328_v1 }
 0x5d7   :  { %1034 = vtanh.f32 %v1246_v3  ;;  %v410_v46 = vrot.slane %v1246_v3, 7 }
 0x5e0   :  { %v1033_v4 = vpop.eup %1032 }
 0x5e1   :  { %353 = vrot.lane.b32.xlu0 %v1033_v4, %s1119_s13 }
 0x5e4   :  { %v1035_v5 = vpop.eup %1034 }
 0x5e5   :  { %355 = vrot.lane.b32.xlu1 %v1035_v5, %s1119_s13 }
 0x653   :  { %v354_v6 = vpop.permute.xlu0 %353 }
 0x654   :  { %v359_v7 = vmul.f32 %v1029_v54, %v354_v6 }
 0x656   :  { %363 = vperm.xlu0 %969, %v359_v7  }
 0x657   :  { %v356_v10 = vpop.permute.xlu1 %355 }
 0x658   :  { %v360_v11 = vmul.f32 %v1031_v57, %v356_v10 }
 0x65a   :  { %368 = vperm.xlu1 %968, %v360_v11   ;;  %971 = vset.pattern.permute.xlu0 %v1120_v47 }
 0x65b   :  { %378 = vperm.xlu0 %971, %v360_v11  }
 0x65e   :  { %970 = vset.pattern.permute.xlu1 %v1120_v47 }
 0x65f   :  { %374 = vperm.xlu1 %970, %v359_v7   ;;  %973 = vset.pattern.permute.xlu0 %v1118_v40 }
 0x663   :  { %972 = vset.pattern.permute.xlu1 %v1118_v40 }
 0x6d1   :  { %v364_v12 = vpop.permute.xlu0 %363 }
 0x6d2   :  { %v371_v20 = vmul.f32 %v364_v12, %v1181_v8 }
 0x6d5   :  { %v369_v13 = vpop.permute.xlu1 %368 }
 0x6d6   :  { %v379_v14 = vpop.permute.xlu0 %378  ;;  %v372_v16 = vmul.f32 %v369_v13, %v1181_v8 }
 0x6d7   :  { %v382_v18 = vmul.f32 %v379_v14, %v1183_v9 }
 0x6d9   :  { %v384_v21 = vadd.f32 %v382_v18, %v372_v16 }
 0x6da   :  { %v375_v19 = vpop.permute.xlu1 %374 }
 0x6db   :  { %v381_v22 = vmul.f32 %v375_v19, %v1183_v9  ;;  %v388_v24 = vrot.slane %v384_v21, 7 }
 0x6dd   :  { %v383_v23 = vadd.f32 %v381_v22, %v371_v20  ;;  %v392_v27 = vadd.f32 %v388_v24, %v1192_v17 }
 0x6df   :  { %v387_v25 = vrot.slane %v383_v23, 7  ;;  %v923_v31 = vmul.f32 -1.442695, %v392_v27 }
 0x6e1   :  { %v391_v26 = vadd.f32 %v387_v25, %v1190_v15 }
 0x6e3   :  { %1036 = vtanh.f32 %v391_v26  ;;  %v922_v30 = vmul.f32 -1.442695, %v391_v26 }
 0x6e4   :  { %1038 = vtanh.f32 %v392_v27 }
 0x6e5   :  { %1040 = vpow2.f32 %v922_v30 }
 0x6e6   :  { %1042 = vpow2.f32 %v923_v31 }
 0x6f0   :  { %v1037_v28 = vpop.eup %1036 }
 0x6f1   :  { %417 = vrot.lane.b32.xlu1 %v1037_v28, %s1116_s2  ;;  %v1039_v29 = vpop.eup %1038 }
 0x6f2   :  { %v1041_v32 = vpop.eup %1040 }
 0x6f3   :  { %v399_v33 = vadd.f32 1.0, %v1041_v32  ;;  %v1043_v34 = vpop.eup %1042 }
 0x6f4   :  { %v400_v35 = vadd.f32 1.0, %v1043_v34 }
 0x6f5   :  { %419 = vrot.lane.b32.xlu1 %v1039_v29, %s1116_s2  ;;  %1044 = vrcp.f32 %v399_v33 }
 0x6f6   :  { %1046 = vrcp.f32 %v400_v35 }
 0x702   :  { %v1045_v36 = vpop.eup %1044 }
 0x703   :  { %v1047_v39 = vpop.eup %1046  ;;  %v413_v44 = vmul.f32 %v1045_v36, %v409_v43 }
 0x704   :  { %v414_v49 = vmul.f32 %v1047_v39, %v410_v46 }
 0x763   :  { %v418_v37 = vpop.permute.xlu1 %417 }
 0x764   :  { %v423_v38 = vmul.f32 %v1045_v36, %v418_v37 }
 0x766   :  { %427 = vrot.lane.b32.xlu0 %v423_v38, %s1117_s3 }
 0x767   :  { %v420_v41 = vpop.permute.xlu1 %419 }
 0x768   :  { %v424_v42 = vmul.f32 %v1047_v39, %v420_v41 }
 0x76a   :  { %429 = vrot.lane.b32.xlu1 %v424_v42, %s1117_s3 }
 0x7d8   :  { %v428_v45 = vpop.permute.xlu0 %427 }
 0x7d9   :  { %v433_v48 = vadd.f32 %v428_v45, %v413_v44 }
 0x7db   :  { %1048 = vtanh.f32 %v433_v48  ;;  %v495_v26 = vrot.slane %v433_v48, 7 }
 0x7dc   :  { %v430_v50 = vpop.permute.xlu1 %429 }
 0x7dd   :  { %v1266_v51 = vadd.f32 %v430_v50, %v414_v49 }
 0x7df   :  { %1050 = vtanh.f32 %v1266_v51  ;;  %v496_v29 = vrot.slane %v1266_v51, 7 }
 0x7e8   :  { %v1049_v52 = vpop.eup %1048 }
 0x7e9   :  { %439 = vrot.lane.b32.xlu0 %v1049_v52, %s1119_s13 }
 0x7ec   :  { %v1051_v53 = vpop.eup %1050 }
 0x7ed   :  { %441 = vrot.lane.b32.xlu1 %v1051_v53, %s1119_s13 }
 0x85b   :  { %v440_v54 = vpop.permute.xlu0 %439 }
 0x85c   :  { %v445_v55 = vmul.f32 %v1045_v36, %v440_v54 }
 0x85e   :  { %449 = vperm.xlu0 %973, %v445_v55  }
 0x85f   :  { %v442_v56 = vpop.permute.xlu1 %441 }
 0x860   :  { %v446_v57 = vmul.f32 %v1047_v39, %v442_v56 }
 0x862   :  { %454 = vperm.xlu1 %972, %v446_v57   ;;  %975 = vset.pattern.permute.xlu0 %v1120_v47 }
 0x863   :  { %464 = vperm.xlu0 %975, %v446_v57  }
 0x866   :  { %974 = vset.pattern.permute.xlu1 %v1120_v47 }
 0x867   :  { %460 = vperm.xlu1 %974, %v445_v55   ;;  %977 = vset.pattern.permute.xlu0 %v1118_v40 }
 0x86b   :  { %976 = vset.pattern.permute.xlu1 %v1118_v40 }
 0x8d9   :  { %v450_v58 = vpop.permute.xlu0 %449 }
 0x8da   :  { %v457_v0 = vmul.f32 %v450_v58, %v1181_v8 }
 0x8dd   :  { %v455_v59 = vpop.permute.xlu1 %454 }
 0x8de   :  { %v465_v60 = vpop.permute.xlu0 %464  ;;  %v458_v61 = vmul.f32 %v455_v59, %v1181_v8 }
 0x8df   :  { %v468_v62 = vmul.f32 %v465_v60, %v1183_v9 }
 0x8e1   :  { %v470_v1 = vadd.f32 %v468_v62, %v458_v61 }
 0x8e2   :  { %v461_v63 = vpop.permute.xlu1 %460 }
 0x8e3   :  { %v467_v2 = vmul.f32 %v461_v63, %v1183_v9  ;;  %v474_v4 = vrot.slane %v470_v1, 7 }
 0x8e5   :  { %v469_v3 = vadd.f32 %v467_v2, %v457_v0  ;;  %v478_v7 = vadd.f32 %v474_v4, %v1192_v17 }
 0x8e7   :  { %v473_v5 = vrot.slane %v469_v3, 7  ;;  %v925_v13 = vmul.f32 -1.442695, %v478_v7 }
 0x8e9   :  { %v477_v6 = vadd.f32 %v473_v5, %v1190_v15 }
 0x8eb   :  { %1052 = vtanh.f32 %v477_v6  ;;  %v924_v12 = vmul.f32 -1.442695, %v477_v6 }
 0x8ec   :  { %1054 = vtanh.f32 %v478_v7 }
 0x8ed   :  { %1056 = vpow2.f32 %v924_v12 }
 0x8ee   :  { %1058 = vpow2.f32 %v925_v13 }
 0x8f8   :  { %v1053_v10 = vpop.eup %1052 }
 0x8f9   :  { %503 = vrot.lane.b32.xlu1 %v1053_v10, %s1116_s2  ;;  %v1055_v11 = vpop.eup %1054 }
 0x8fa   :  { %v1057_v14 = vpop.eup %1056 }
 0x8fb   :  { %v485_v16 = vadd.f32 1.0, %v1057_v14  ;;  %v1059_v18 = vpop.eup %1058 }
 0x8fc   :  { %v486_v19 = vadd.f32 1.0, %v1059_v18 }
 0x8fd   :  { %505 = vrot.lane.b32.xlu1 %v1055_v11, %s1116_s2  ;;  %1060 = vrcp.f32 %v485_v16 }
 0x8fe   :  { %1062 = vrcp.f32 %v486_v19 }
 0x90a   :  { %v1061_v20 = vpop.eup %1060 }
 0x90b   :  { %v1063_v23 = vpop.eup %1062  ;;  %v499_v27 = vmul.f32 %v1061_v20, %v495_v26 }
 0x90c   :  { %v500_v31 = vmul.f32 %v1063_v23, %v496_v29 }
 0x96b   :  { %v504_v21 = vpop.permute.xlu1 %503 }
 0x96c   :  { %v509_v22 = vmul.f32 %v1061_v20, %v504_v21 }
 0x96e   :  { %513 = vrot.lane.b32.xlu0 %v509_v22, %s1117_s3 }
 0x96f   :  { %v506_v24 = vpop.permute.xlu1 %505 }
 0x970   :  { %v510_v25 = vmul.f32 %v1063_v23, %v506_v24 }
 0x972   :  { %515 = vrot.lane.b32.xlu1 %v510_v25, %s1117_s3 }
 0x9e0   :  { %v514_v28 = vpop.permute.xlu0 %513 }
 0x9e1   :  { %v519_v30 = vadd.f32 %v514_v28, %v499_v27 }
 0x9e3   :  { %1064 = vtanh.f32 %v519_v30  ;;  %v581_v6 = vrot.slane %v519_v30, 7 }
 0x9e4   :  { %v516_v32 = vpop.permute.xlu1 %515 }
 0x9e5   :  { %v1286_v33 = vadd.f32 %v516_v32, %v500_v31 }
 0x9e7   :  { %1066 = vtanh.f32 %v1286_v33  ;;  %v582_v11 = vrot.slane %v1286_v33, 7 }
 0x9f0   :  { %v1065_v34 = vpop.eup %1064 }
 0x9f1   :  { %525 = vrot.lane.b32.xlu0 %v1065_v34, %s1119_s13 }
 0x9f4   :  { %v1067_v35 = vpop.eup %1066 }
 0x9f5   :  { %527 = vrot.lane.b32.xlu1 %v1067_v35, %s1119_s13 }
 0xa63   :  { %v526_v36 = vpop.permute.xlu0 %525 }
 0xa64   :  { %v531_v37 = vmul.f32 %v1061_v20, %v526_v36 }
 0xa66   :  { %535 = vperm.xlu0 %977, %v531_v37  }
 0xa67   :  { %v528_v38 = vpop.permute.xlu1 %527 }
 0xa68   :  { %v532_v39 = vmul.f32 %v1063_v23, %v528_v38 }
 0xa6a   :  { %540 = vperm.xlu1 %976, %v532_v39   ;;  %979 = vset.pattern.permute.xlu0 %v1120_v47 }
 0xa6b   :  { %550 = vperm.xlu0 %979, %v532_v39  }
 0xa6e   :  { %978 = vset.pattern.permute.xlu1 %v1120_v47 }
 0xa6f   :  { %546 = vperm.xlu1 %978, %v531_v37   ;;  %981 = vset.pattern.permute.xlu0 %v1118_v40 }
 0xa73   :  { %980 = vset.pattern.permute.xlu1 %v1118_v40 }
 0xae1   :  { %v536_v41 = vpop.permute.xlu0 %535 }
 0xae2   :  { %v543_v48 = vmul.f32 %v536_v41, %v1181_v8 }
 0xae5   :  { %v541_v42 = vpop.permute.xlu1 %540 }
 0xae6   :  { %v551_v43 = vpop.permute.xlu0 %550  ;;  %v544_v44 = vmul.f32 %v541_v42, %v1181_v8 }
 0xae7   :  { %v554_v45 = vmul.f32 %v551_v43, %v1183_v9 }
 0xae9   :  { %v556_v49 = vadd.f32 %v554_v45, %v544_v44 }
 0xaea   :  { %v547_v46 = vpop.permute.xlu1 %546 }
 0xaeb   :  { %v553_v50 = vmul.f32 %v547_v46, %v1183_v9  ;;  %v560_v52 = vrot.slane %v556_v49, 7 }
 0xaed   :  { %v555_v51 = vadd.f32 %v553_v50, %v543_v48  ;;  %v564_v55 = vadd.f32 %v560_v52, %v1192_v17 }
 0xaef   :  { %v559_v53 = vrot.slane %v555_v51, 7  ;;  %v927_v59 = vmul.f32 -1.442695, %v564_v55 }
 0xaf1   :  { %v563_v54 = vadd.f32 %v559_v53, %v1190_v15 }
 0xaf3   :  { %1068 = vtanh.f32 %v563_v54  ;;  %v926_v58 = vmul.f32 -1.442695, %v563_v54 }
 0xaf4   :  { %1070 = vtanh.f32 %v564_v55 }
 0xaf5   :  { %1072 = vpow2.f32 %v926_v58 }
 0xaf6   :  { %1074 = vpow2.f32 %v927_v59 }
 0xb00   :  { %v1069_v56 = vpop.eup %1068 }
 0xb01   :  { %589 = vrot.lane.b32.xlu1 %v1069_v56, %s1116_s2  ;;  %v1071_v57 = vpop.eup %1070 }
 0xb02   :  { %v1073_v60 = vpop.eup %1072 }
 0xb03   :  { %v571_v61 = vadd.f32 1.0, %v1073_v60  ;;  %v1075_v62 = vpop.eup %1074 }
 0xb04   :  { %v572_v63 = vadd.f32 1.0, %v1075_v62 }
 0xb05   :  { %591 = vrot.lane.b32.xlu1 %v1071_v57, %s1116_s2  ;;  %1076 = vrcp.f32 %v571_v61 }
 0xb06   :  { %1078 = vrcp.f32 %v572_v63 }
 0xb12   :  { %v1077_v0 = vpop.eup %1076 }
 0xb13   :  { %v1079_v3 = vpop.eup %1078  ;;  %v585_v7 = vmul.f32 %v1077_v0, %v581_v6 }
 0xb14   :  { %v586_v13 = vmul.f32 %v1079_v3, %v582_v11 }
 0xb73   :  { %v590_v1 = vpop.permute.xlu1 %589 }
 0xb74   :  { %v595_v2 = vmul.f32 %v1077_v0, %v590_v1 }
 0xb76   :  { %599 = vrot.lane.b32.xlu0 %v595_v2, %s1117_s3 }
 0xb77   :  { %v592_v4 = vpop.permute.xlu1 %591 }
 0xb78   :  { %v596_v5 = vmul.f32 %v1079_v3, %v592_v4 }
 0xb7a   :  { %601 = vrot.lane.b32.xlu1 %v596_v5, %s1117_s3 }
 0xbe8   :  { %v600_v10 = vpop.permute.xlu0 %599 }
 0xbe9   :  { %v605_v12 = vadd.f32 %v600_v10, %v585_v7 }
 0xbeb   :  { %1080 = vtanh.f32 %v605_v12  ;;  %v667_v53 = vrot.slane %v605_v12, 7 }
 0xbec   :  { %v602_v14 = vpop.permute.xlu1 %601 }
 0xbed   :  { %v1306_v16 = vadd.f32 %v602_v14, %v586_v13 }
 0xbef   :  { %1082 = vtanh.f32 %v1306_v16  ;;  %v668_v56 = vrot.slane %v1306_v16, 7 }
 0xbf8   :  { %v1081_v18 = vpop.eup %1080 }
 0xbf9   :  { %611 = vrot.lane.b32.xlu0 %v1081_v18, %s1119_s13 }
 0xbfc   :  { %v1083_v19 = vpop.eup %1082 }
 0xbfd   :  { %613 = vrot.lane.b32.xlu1 %v1083_v19, %s1119_s13 }
 0xc6b   :  { %v612_v20 = vpop.permute.xlu0 %611 }
 0xc6c   :  { %v617_v21 = vmul.f32 %v1077_v0, %v612_v20 }
 0xc6e   :  { %621 = vperm.xlu0 %981, %v617_v21  }
 0xc6f   :  { %v614_v22 = vpop.permute.xlu1 %613 }
 0xc70   :  { %v618_v23 = vmul.f32 %v1079_v3, %v614_v22 }
 0xc72   :  { %626 = vperm.xlu1 %980, %v618_v23   ;;  %983 = vset.pattern.permute.xlu0 %v1120_v47 }
 0xc73   :  { %636 = vperm.xlu0 %983, %v618_v23  }
 0xc76   :  { %982 = vset.pattern.permute.xlu1 %v1120_v47 }
 0xc77   :  { %632 = vperm.xlu1 %982, %v617_v21   ;;  %985 = vset.pattern.permute.xlu0 %v1118_v40 }
 0xc7b   :  { %984 = vset.pattern.permute.xlu1 %v1118_v40 }
 0xce9   :  { %v622_v24 = vpop.permute.xlu0 %621 }
 0xcea   :  { %v629_v30 = vmul.f32 %v622_v24, %v1181_v8 }
 0xced   :  { %v627_v25 = vpop.permute.xlu1 %626 }
 0xcee   :  { %v637_v26 = vpop.permute.xlu0 %636  ;;  %v630_v27 = vmul.f32 %v627_v25, %v1181_v8 }
 0xcef   :  { %v640_v28 = vmul.f32 %v637_v26, %v1183_v9 }
 0xcf1   :  { %v642_v31 = vadd.f32 %v640_v28, %v630_v27 }
 0xcf2   :  { %v633_v29 = vpop.permute.xlu1 %632 }
 0xcf3   :  { %v639_v32 = vmul.f32 %v633_v29, %v1183_v9  ;;  %v646_v34 = vrot.slane %v642_v31, 7 }
 0xcf5   :  { %v641_v33 = vadd.f32 %v639_v32, %v629_v30  ;;  %v650_v40 = vadd.f32 %v646_v34, %v1192_v17 }
 0xcf7   :  { %v645_v35 = vrot.slane %v641_v33, 7  ;;  %v929_v41 = vmul.f32 -1.442695, %v650_v40 }
 0xcf9   :  { %v649_v36 = vadd.f32 %v645_v35, %v1190_v15 }
 0xcfb   :  { %1084 = vtanh.f32 %v649_v36  ;;  %v928_v39 = vmul.f32 -1.442695, %v649_v36 }
 0xcfc   :  { %1086 = vtanh.f32 %v650_v40 }
 0xcfd   :  { %1088 = vpow2.f32 %v928_v39  ;;  %v793_v39 = vld [vmem:[%s1363_s4] sm:$0x3]  ;;  %s1123_s4 = smov 122  }
 0xcfe   :  { %1090 = vpow2.f32 %v929_v41 }
 0xd08   :  { %v1085_v37 = vpop.eup %1084 }
 0xd09   :  { %675 = vrot.lane.b32.xlu1 %v1085_v37, %s1116_s2  ;;  %v1087_v38 = vpop.eup %1086 }
 0xd0a   :  { %v1089_v42 = vpop.eup %1088 }
 0xd0b   :  { %v657_v43 = vadd.f32 1.0, %v1089_v42  ;;  %v1091_v44 = vpop.eup %1090 }
 0xd0c   :  { %v658_v45 = vadd.f32 1.0, %v1091_v44 }
 0xd0d   :  { %677 = vrot.lane.b32.xlu1 %v1087_v38, %s1116_s2  ;;  %1092 = vrcp.f32 %v657_v43  ;;  %v1121_v38 = vmov 0.0  }
 0xd0e   :  { %1094 = vrcp.f32 %v658_v45  ;;  %947 = vmatprep.subr.mxu1 %v1121_v38  ;;  %949 = vmatprep.mubr.msk.f32.mxu1 %vm1122_vm3, %v1121_v38 }
 0xd0f   :  { %948 = vmatpush3.msk.msra.mxu1 %vm812_vm2, %v793_v39 }
 0xd1a   :  { %v1093_v46 = vpop.eup %1092 }
 0xd1b   :  { %v1095_v50 = vpop.eup %1094  ;;  %v671_v54 = vmul.f32 %v1093_v46, %v667_v53  ;;  %v13_v53 = vstv %s1364_s7 }
 0xd1c   :  { %v672_v58 = vmul.f32 %v1095_v50, %v668_v56  ;;  %14 = vst [vmem:[#allocation2] sm:$0x1] %v13_v53 }
 0xd7b   :  { %v676_v48 = vpop.permute.xlu1 %675 }
 0xd7c   :  { %v681_v49 = vmul.f32 %v1093_v46, %v676_v48 }
 0xd7e   :  { %685 = vrot.lane.b32.xlu0 %v681_v49, %s1117_s3 }
 0xd7f   :  { %v678_v51 = vpop.permute.xlu1 %677 }
 0xd80   :  { %v682_v52 = vmul.f32 %v1095_v50, %v678_v51 }
 0xd82   :  { %687 = vrot.lane.b32.xlu1 %v682_v52, %s1117_s3 }
 0xdf0   :  { %v686_v55 = vpop.permute.xlu0 %685 }
 0xdf1   :  { %v691_v57 = vadd.f32 %v686_v55, %v671_v54  ;;  %v932_v54 = vld [vmem:[%s1365_s5] ss:$0 sm:$0xff] }
 0xdf3   :  { %1096 = vtanh.f32 %v691_v57  ;;  %v753_v30 = vrot.slane %v691_v57, 7 }
 0xdf4   :  { %v688_v59 = vpop.permute.xlu1 %687 }
 0xdf5   :  { %v692_v60 = vadd.f32 %v688_v59, %v672_v58  ;;  %v935_v58 = vld [vmem:[%s1366_s6] ss:$0 sm:$0xff] }
 0xdf7   :  { %1098 = vtanh.f32 %v692_v60  ;;  %v754_v33 = vrot.slane %v692_v60, 7 }
 0xe00   :  { %v1097_v61 = vpop.eup %1096 }
 0xe01   :  { %697 = vrot.lane.b32.xlu0 %v1097_v61, %s1119_s13 }
 0xe04   :  { %v1099_v62 = vpop.eup %1098 }
 0xe05   :  { %699 = vrot.lane.b32.xlu1 %v1099_v62, %s1119_s13  ;;  %v936_v62 = vld [vmem:[#allocation2] ss:$0 sm:$0xff] }
 0xe73   :  { %v698_v63 = vpop.permute.xlu0 %697 }
 0xe74   :  { %v703_v0 = vmul.f32 %v1093_v46, %v698_v63 }
 0xe76   :  { %707 = vperm.xlu0 %985, %v703_v0  }
 0xe77   :  { %v700_v1 = vpop.permute.xlu1 %699 }
 0xe78   :  { %v704_v2 = vmul.f32 %v1095_v50, %v700_v1 }
 0xe7a   :  { %712 = vperm.xlu1 %984, %v704_v2   ;;  %987 = vset.pattern.permute.xlu0 %v1120_v47 }
 0xe7b   :  { %722 = vperm.xlu0 %987, %v704_v2  }
 0xe7e   :  { %986 = vset.pattern.permute.xlu1 %v1120_v47 }
 0xe7f   :  { %718 = vperm.xlu1 %986, %v703_v0  }
 0xef1   :  { %v708_v3 = vpop.permute.xlu0 %707 }
 0xef2   :  { %v715_v11 = vmul.f32 %v708_v3, %v1181_v8 }
 0xef5   :  { %v713_v4 = vpop.permute.xlu1 %712 }
 0xef6   :  { %v723_v5 = vpop.permute.xlu0 %722  ;;  %v716_v6 = vmul.f32 %v713_v4, %v1181_v8 }
 0xef7   :  { %v726_v7 = vmul.f32 %v723_v5, %v1183_v9 }
 0xef9   :  { %v728_v12 = vadd.f32 %v726_v7, %v716_v6 }
 0xefa   :  { %v719_v10 = vpop.permute.xlu1 %718 }
 0xefb   :  { %v725_v13 = vmul.f32 %v719_v10, %v1183_v9  ;;  %v732_v16 = vrot.slane %v728_v12, 7 }
 0xefd   :  { %v727_v14 = vadd.f32 %v725_v13, %v715_v11  ;;  %v736_v47 = vadd.f32 %v732_v16, %v1192_v17 }
 0xeff   :  { %v731_v18 = vrot.slane %v727_v14, 7  ;;  %v931_v8 = vmul.f32 -1.442695, %v736_v47 }
 0xf01   :  { %v735_v19 = vadd.f32 %v731_v18, %v1190_v15 }
 0xf03   :  { %1100 = vtanh.f32 %v735_v19  ;;  %v930_v22 = vmul.f32 -1.442695, %v735_v19 }
 0xf04   :  { %1102 = vtanh.f32 %v736_v47 }
 0xf05   :  { %1104 = vpow2.f32 %v930_v22 }
 0xf06   :  { %1106 = vpow2.f32 %v931_v8 }
 0xf10   :  { %v1101_v20 = vpop.eup %1100 }
 0xf11   :  { %761 = vrot.lane.b32.xlu1 %v1101_v20, %s1116_s2  ;;  %v1103_v21 = vpop.eup %1102 }
 0xf12   :  { %v1105_v9 = vpop.eup %1104 }
 0xf13   :  { %v743_v23 = vadd.f32 1.0, %v1105_v9  ;;  %v1107_v24 = vpop.eup %1106 }
 0xf14   :  { %v744_v25 = vadd.f32 1.0, %v1107_v24 }
 0xf15   :  { %763 = vrot.lane.b32.xlu1 %v1103_v21, %s1116_s2  ;;  %1108 = vrcp.f32 %v743_v23 }
 0xf16   :  { %1110 = vrcp.f32 %v744_v25 }
 0xf22   :  { %v1109_v15 = vpop.eup %1108 }
 0xf23   :  { %v1111_v27 = vpop.eup %1110  ;;  %v757_v31 = vmul.f32 %v1109_v15, %v753_v30 }
 0xf24   :  { %v758_v35 = vmul.f32 %v1111_v27, %v754_v33 }
 0xf83   :  { %v762_v17 = vpop.permute.xlu1 %761 }
 0xf84   :  { %v767_v26 = vmul.f32 %v1109_v15, %v762_v17 }
 0xf86   :  { %771 = vrot.lane.b32.xlu0 %v767_v26, %s1117_s3 }
 0xf87   :  { %v764_v28 = vpop.permute.xlu1 %763 }
 0xf88   :  { %v768_v29 = vmul.f32 %v1111_v27, %v764_v28 }
 0xf8a   :  { %773 = vrot.lane.b32.xlu1 %v768_v29, %s1117_s3 }
 0xff8   :  { %v772_v32 = vpop.permute.xlu0 %771 }
 0xff9   :  { %v777_v34 = vadd.f32 %v772_v32, %v757_v31 }
 0xffb   :  { %1112 = vtanh.f32 %v777_v34 }
 0xffc   :  { %v774_v36 = vpop.permute.xlu1 %773 }
 0xffd   :  { %v778_v40 = vadd.f32 %v774_v36, %v758_v35 }
 0xfff   :  { %1114 = vtanh.f32 %v778_v40 }
0x1008   :  { %v1113_v37 = vpop.eup %1112 }
0x1009   :  { %783 = vrot.lane.b32.xlu0 %v1113_v37, %s1119_s13 }
0x100c   :  { %v1115_v41 = vpop.eup %1114 }
0x100d   :  { %785 = vrot.lane.b32.xlu1 %v1115_v41, %s1119_s13 }
0x107b   :  { %v784_v42 = vpop.permute.xlu0 %783 }
0x107c   :  { %v789_v43 = vmul.f32 %v1109_v15, %v784_v42 }
0x107e   :  { %v791_v45 = vmax.f32 %v789_v43, 0.0 }
0x107f   :  { %v786_v44 = vpop.permute.xlu1 %785 }
0x1080   :  { %v790_v46 = vmul.f32 %v1111_v27, %v786_v44  ;;  %v803_v49 = vrot.slane %v791_v45, 7 }
0x1082   :  { %v792_v48 = vmax.f32 %v790_v46, 0.0 }
0x1084   :  { %v804_v50 = vrot.slane %v792_v48, 6 }
0x1086   :  { %v806_v51 = vsel %vm805_vm4, %v804_v50, %v803_v49 }
0x1087   :  { %807 = vrot.lane.b32.xlu0 %v806_v51, %s1123_s4 }
0x10f9   :  { %v808_v52 = vpop.permute.xlu0 %807 }
0x10fa   :  { %950 = vmatmul.mubr.msk.f32.vlgmr.msra.gmra.mxu1 %vm809_vm5, %v808_v52 }
0x11ba   :  { %v882_v55 = vpop.f32.mrf.mxu1 }
0x11bb   :  { %v883_v56 = vadd.f32 %v932_v54, %v882_v55 }
0x11bc   :  { %v951_v57 = vpop.f32.mrf.mxu1 }
0x11bd   :  { %v886_v59 = vmax.f32 %v883_v56, 0.0 }
0x11bf   :  { %v894_v60 = vmul.f32 %v935_v58, %v886_v59 }
0x11c1   :  { %v895_v61 = vsel %vm812_vm2, %v894_v60, 0.0 }
0x11c2   :  { %896 = vadd.xlane.f32.xlu1 %v895_v61 }
0x124b   :  { %v897_v63 = vpop.xlane.xlu1 %896 }
0x124c   :  { %v905_v0 = vadd.f32 %v936_v62, %v897_v63 }
0x124e   :  { %907 = vst.msk [vmem:[%s1367_s8] sm:$0x3] %vm906_vm6, %v905_v0 }

</bundles_post_ra>
